<compile_context>
chip_gen: v6e
topology: v6e:2x2x1
jax: 0.10.0
libtpu: 0.0.40
codegen_flags: <defaults>
</compile_context>

<pallas_src>
import numpy as np
import jax
import jax.numpy as jnp
from jax.experimental import pallas as pl
from jax.experimental.pallas import tpu as pltpu

# ---- problem sizes (small, consistent with the module's Linear-MLP forward) ----
MB = 256   # minibatch
P  = 16    # input_size
D  = 8     # code_size
H  = 32    # hidden size of encoder/decoder MLPs
K  = 2     # K_train importance samples

_HALF_LOG2PI = 0.5 * float(np.log(2.0 * np.pi))
# prior scale exactly as the PyTorch code builds it: softplus(log(2.718281 - 1))
_PRIOR_SCALE = float(np.log1p(np.exp(np.log(2.718281 - 1.0))))
_LOG_PRIOR_SCALE = float(np.log(_PRIOR_SCALE))

# bias-slab row offsets (all multiples of 8 -> aligned f32 sublane slices)
_OFF_BE1 = 0
_OFF_BE2 = H                    # 32
_OFF_BD1 = H + 2 * D            # 48
_OFF_BD2 = 2 * H + 2 * D        # 80
_B_ROWS  = 2 * H + 2 * D + 2 * P  # 112


def vae_kernel(data_ref, mask_ref, eps_ref,
               we1t_ref, we2t_ref, wd1t_ref, wd2t_ref, b_ref,
               out_ref):
    data = data_ref[...]          # [P, BC]  f32
    mask = mask_ref[...]          # [P, BC]  f32
    eps_all = eps_ref[...]        # [K*D, BC] f32

    b = b_ref[...]                # [112, 1] f32
    b_enc1 = b[_OFF_BE1:_OFF_BE2, :]   # [H, 1]
    b_enc2 = b[_OFF_BE2:_OFF_BD1, :]   # [2D, 1]
    b_dec1 = b[_OFF_BD1:_OFF_BD2, :]   # [H, 1]
    b_dec2 = b[_OFF_BD2:, :]           # [2P, 1]

    # ---------------- encoder MLP (computed ONCE per data column) ------------
    # bf16 operands on the MXU, f32 accumulation; elementwise math stays f32.
    h_enc = jnp.tanh(
        jnp.dot(we1t_ref[...], data.astype(jnp.bfloat16),
                preferred_element_type=jnp.float32) + b_enc1)          # [H, BC]
    heads = jnp.dot(we2t_ref[...], h_enc.astype(jnp.bfloat16),
                    preferred_element_type=jnp.float32) + b_enc2       # [2D, BC]
    mu_q = heads[:D, :]                                                # [D, BC]
    sigma_q = jax.nn.softplus(heads[D:, :])                            # [D, BC]
    # NOTE: log(softplus(.)) can hit -inf if softplus underflows; matches the
    # reference module exactly, so no clamp is applied here.
    log_sigma_q = jnp.log(sigma_q)

    # mask row-sum is sample-independent: hoist it out of the K loop.
    mask_sum = jnp.sum(mask, axis=0, keepdims=True)                    # [1, BC]

    dists = []
    rates = []
    for k in range(K):                      # static, K == 2
        eps_k = eps_all[k * D:(k + 1) * D, :]                          # [D, BC]
        # reparameterized sample z ~ q(z|x)
        z = mu_q + sigma_q * eps_k                                     # [D, BC]

        # rate_k = log q(z|x) - log p(z), summed over code dim (.independent())
        logqz = (jnp.sum(-0.5 * eps_k * eps_k - log_sigma_q,
                         axis=0, keepdims=True)
                 - D * _HALF_LOG2PI)                                   # [1, BC]
        zs = z * (1.0 / _PRIOR_SCALE)
        logpz = (jnp.sum(-0.5 * zs * zs, axis=0, keepdims=True)
                 - D * (_LOG_PRIOR_SCALE + _HALF_LOG2PI))              # [1, BC]
        rates.append(logqz - logpz)

        # ---------------- decoder MLP on z --------------------------------
        h_dec = jnp.tanh(
            jnp.dot(wd1t_ref[...], z.astype(jnp.bfloat16),
                    preferred_element_type=jnp.float32) + b_dec1)      # [H, BC]
        pheads = jnp.dot(wd2t_ref[...], h_dec.astype(jnp.bfloat16),
                         preferred_element_type=jnp.float32) + b_dec2  # [2P, BC]
        mu_p = pheads[:P, :]                                           # [P, BC]
        sigma_p = jax.nn.softplus(pheads[P:, :])                       # [P, BC]

        # distortion = -log p(x | z), masked and summed over features.
        # Exact division (the squared term doubles any reciprocal error).
        diff = (data - mu_p) / sigma_p
        dist = (0.5 * jnp.sum(diff * diff * mask, axis=0, keepdims=True)
                + jnp.sum(jnp.log(sigma_p) * mask, axis=0, keepdims=True)
                + _HALF_LOG2PI * mask_sum)                             # [1, BC]
        dists.append(dist)

    # single lane-dense store: rows 0..K-1 = distortion_k, rows K..2K-1 = rate_k
    out_ref[...] = jnp.concatenate(dists + rates, axis=0)              # [2K, BC]


def prepare_params(params):
    """One-time packing: transposed bf16 weights + one f32 bias slab."""
    we1, be1, we2, be2, wd1, bd1, wd2, bd2 = params
    bf = lambda w: jnp.asarray(w.T, dtype=jnp.bfloat16)
    b_slab = jnp.concatenate(
        [jnp.ravel(be1), jnp.ravel(be2), jnp.ravel(bd1), jnp.ravel(bd2)]
    ).astype(jnp.float32).reshape(_B_ROWS, 1)
    return (bf(we1), bf(we2), bf(wd1), bf(wd2), b_slab)


def _pick_bc():
    """Columns per grid step: whole batch on single-TC chips, half on dual-TC v7x."""
    try:
        kind = jax.devices()[0].device_kind.lower()
    except Exception:
        kind = ""
    if ("v7" in kind) or ("7x" in kind):
        return MB // 2   # 2 parallel grid steps -> one per TensorCore
    return MB            # v5e / v6e: single step, minimal fixed overhead


@jax.jit
def vae_forward(data, mask, eps, prepared):
    """data [MB,P], mask [MB,P], eps [K,MB,D] (torch layout). Returns (dist, rate) each [K,MB]."""
    we1t, we2t, wd1t, wd2t, b_slab = prepared
    BC = _pick_bc()
    assert MB % BC == 0 and BC % 128 == 0
    n_blocks = MB // BC

    data_t = data.T                                              # [P, MB]
    mask_t = mask.T                                              # [P, MB]
    eps_t = jnp.transpose(eps, (0, 2, 1)).reshape(K * D, MB)     # [K*D, MB]

    col  = lambda rows: pl.BlockSpec((rows, BC), lambda i: (0, i))
    full = lambda x: pl.BlockSpec(x.shape, lambda i: (0, 0))     # DMA'd once, VMEM-resident

    out = pl.pallas_call(
        vae_kernel,
        out_shape=jax.ShapeDtypeStruct((2 * K, MB), jnp.float32),
        grid=(n_blocks,),
        in_specs=[col(P), col(P), col(K * D),
                  full(we1t), full(we2t), full(wd1t), full(wd2t), full(b_slab)],
        out_specs=pl.BlockSpec((2 * K, BC), lambda i: (0, i)),
        compiler_params=pltpu.CompilerParams(
            dimension_semantics=("parallel",)),
    )(data_t, mask_t, eps_t, we1t, we2t, wd1t, wd2t, b_slab)

    distortion_obs_i = out[:K, :]          # [K, MB]
    rate_i = out[K:, :]                    # [K, MB]
    return distortion_obs_i, rate_i


# ------------------- pure-JAX f32 reference for checking -------------------
def vae_reference(data, mask, eps, params):
    we1, be1, we2, be2, wd1, bd1, wd2, bd2 = params
    h = jnp.tanh(data @ we1 + be1)
    enc = h @ we2 + be2
    mu_q, sigma_q = enc[:, :D], jax.nn.softplus(enc[:, D:])
    z = mu_q[None] + sigma_q[None] * eps                      # [K, MB, D]
    logqz = jnp.sum(-0.5 * eps**2 - jnp.log(sigma_q)[None] - _HALF_LOG2PI, axis=-1)
    zs = z / _PRIOR_SCALE
    logpz = jnp.sum(-0.5 * zs**2 - _LOG_PRIOR_SCALE - _HALF_LOG2PI, axis=-1)
    rate = logqz - logpz
    z2 = z.reshape(K * MB, D)
    hd = jnp.tanh(z2 @ wd1 + bd1)
    dec = hd @ wd2 + bd2
    mu_p = dec[:, :P].reshape(K, MB, P)
    sigma_p = jax.nn.softplus(dec[:, P:]).reshape(K, MB, P)
    diff = (data[None] - mu_p) / sigma_p
    neg_logp = 0.5 * diff**2 + jnp.log(sigma_p) + _HALF_LOG2PI
    dist = jnp.sum(neg_logp * mask[None], axis=-1)
    return dist, rate


if __name__ == "__main__":
    key = jax.random.PRNGKey(0)
    k_data, k_mask, k_eps, k_w, k_b = jax.random.split(key, 5)
    kw1, kw2, kw3, kw4 = jax.random.split(k_w, 4)
    kb1, kb2, kb3, kb4 = jax.random.split(k_b, 4)

    data = jax.random.normal(k_data, (MB, P), dtype=jnp.float32)
    mask = (jax.random.uniform(k_mask, (MB, P)) > 0.3).astype(jnp.float32)
    eps  = jax.random.normal(k_eps, (K, MB, D), dtype=jnp.float32)

    # Deterministic parameter init; fused mu/sigma heads exactly as the PyTorch
    # module's Encoder (P->H->2D) and Decoder (D->H->2P) Linear stacks.
    we1 = 0.1 * jax.random.normal(kw1, (P, H), dtype=jnp.float32)
    be1 = 0.05 * jax.random.normal(kb1, (H,), dtype=jnp.float32)
    we2 = 0.1 * jax.random.normal(kw2, (H, 2 * D), dtype=jnp.float32)
    be2 = 0.05 * jax.random.normal(kb2, (2 * D,), dtype=jnp.float32)
    wd1 = 0.1 * jax.random.normal(kw3, (D, H), dtype=jnp.float32)
    bd1 = 0.05 * jax.random.normal(kb3, (H,), dtype=jnp.float32)
    wd2 = 0.1 * jax.random.normal(kw4, (H, 2 * P), dtype=jnp.float32)
    bd2 = 0.05 * jax.random.normal(kb4, (2 * P,), dtype=jnp.float32)
    params = (we1, be1, we2, be2, wd1, bd1, wd2, bd2)

    prepared = prepare_params(params)           # one-time pack / transpose / bf16 cast
    dist, rate = vae_forward(data, mask, eps, prepared)
    jax.block_until_ready((dist, rate))

    dist_ref, rate_ref = vae_reference(data, mask, eps, params)
    assert dist.shape == (K, MB) and rate.shape == (K, MB)
    # Tolerance accounts for bf16 MXU operands (f32 accumulation) vs the pure
    # f32 reference.
    np.testing.assert_allclose(np.asarray(dist), np.asarray(dist_ref),
                               rtol=2e-2, atol=5e-2)
    np.testing.assert_allclose(np.asarray(rate), np.asarray(rate_ref),
                               rtol=2e-2, atol=5e-2)
    print("KERNEL_OK")
</pallas_src>

<mosaic_0001>
module attributes {stable_mosaic.version = 11 : i64} {
  func.func @vae_kernel(%arg0: i32, %arg1: memref<16x256xf32, #tpu.memory_space<vmem>>, %arg2: memref<16x256xf32, #tpu.memory_space<vmem>>, %arg3: memref<16x256xf32, #tpu.memory_space<vmem>>, %arg4: memref<32x16xbf16, #tpu.memory_space<vmem>>, %arg5: memref<16x32xbf16, #tpu.memory_space<vmem>>, %arg6: memref<32x8xbf16, #tpu.memory_space<vmem>>, %arg7: memref<32x32xbf16, #tpu.memory_space<vmem>>, %arg8: memref<112x1xf32, #tpu.memory_space<vmem>>, %arg9: memref<4x256xf32, #tpu.memory_space<vmem>>) attributes {dimension_semantics = [#tpu.dimension_semantics<parallel>], iteration_bounds = array<i64: 1>, scalar_prefetch = 0 : i64, scratch_operands = 0 : i64, tpu.core_type = #tpu.core_type<tc>, window_params = [{transform_indices = @transform_0, window_bounds = array<i64: 16, 256>}, {transform_indices = @transform_1, window_bounds = array<i64: 16, 256>}, {transform_indices = @transform_2, window_bounds = array<i64: 16, 256>}, {pipeline_mode = #tpu.pipeline_mode<synchronous>, transform_indices = @transform_3, window_bounds = array<i64: 32, 16>}, {pipeline_mode = #tpu.pipeline_mode<synchronous>, transform_indices = @transform_4, window_bounds = array<i64: 16, 32>}, {pipeline_mode = #tpu.pipeline_mode<synchronous>, transform_indices = @transform_5, window_bounds = array<i64: 32, 8>}, {pipeline_mode = #tpu.pipeline_mode<synchronous>, transform_indices = @transform_6, window_bounds = array<i64: 32, 32>}, {pipeline_mode = #tpu.pipeline_mode<synchronous>, transform_indices = @transform_7, window_bounds = array<i64: 112, 1>}, {transform_indices = @transform_8, window_bounds = array<i64: 4, 256>}]} {
    %c0 = arith.constant 0 : index
    %c0_0 = arith.constant 0 : index
    %0 = vector.load %arg1[%c0, %c0_0] : memref<16x256xf32, #tpu.memory_space<vmem>>, vector<16x256xf32>
    %c0_1 = arith.constant 0 : index
    %c0_2 = arith.constant 0 : index
    %1 = vector.load %arg2[%c0_1, %c0_2] : memref<16x256xf32, #tpu.memory_space<vmem>>, vector<16x256xf32>
    %c0_3 = arith.constant 0 : index
    %c0_4 = arith.constant 0 : index
    %2 = vector.load %arg3[%c0_3, %c0_4] : memref<16x256xf32, #tpu.memory_space<vmem>>, vector<16x256xf32>
    %c0_5 = arith.constant 0 : index
    %c0_6 = arith.constant 0 : index
    %3 = vector.load %arg8[%c0_5, %c0_6] : memref<112x1xf32, #tpu.memory_space<vmem>>, vector<112x1xf32>
    %4 = vector.extract_strided_slice %3 {offsets = [0, 0], sizes = [32, 1], strides = [1, 1]} : vector<112x1xf32> to vector<32x1xf32>
    %5 = vector.extract_strided_slice %3 {offsets = [32, 0], sizes = [16, 1], strides = [1, 1]} : vector<112x1xf32> to vector<16x1xf32>
    %6 = vector.extract_strided_slice %3 {offsets = [48, 0], sizes = [32, 1], strides = [1, 1]} : vector<112x1xf32> to vector<32x1xf32>
    %7 = vector.extract_strided_slice %3 {offsets = [80, 0], sizes = [32, 1], strides = [1, 1]} : vector<112x1xf32> to vector<32x1xf32>
    %c0_7 = arith.constant 0 : index
    %c0_8 = arith.constant 0 : index
    %8 = vector.load %arg4[%c0_7, %c0_8] : memref<32x16xbf16, #tpu.memory_space<vmem>>, vector<32x16xbf16>
    %9 = arith.truncf %0 : vector<16x256xf32> to vector<16x256xbf16>
    %cst = arith.constant dense<0.000000e+00> : vector<32x256xf32>
    %10 = tpu.matmul %8, %9, %cst {dimension_numbers = #tpu.dot_dimension_numbers<[1], [0], [0], [1], [0, 0, 1, 1], [], []>} : vector<32x16xbf16>, vector<16x256xbf16>, vector<32x256xf32> -> vector<32x256xf32>
    %11 = vector.broadcast %4 : vector<32x1xf32> to vector<32x256xf32>
    %12 = arith.addf %10, %11 : vector<32x256xf32>
    %13 = math.tanh %12 : vector<32x256xf32>
    %c0_9 = arith.constant 0 : index
    %c0_10 = arith.constant 0 : index
    %14 = vector.load %arg5[%c0_9, %c0_10] : memref<16x32xbf16, #tpu.memory_space<vmem>>, vector<16x32xbf16>
    %15 = arith.truncf %13 : vector<32x256xf32> to vector<32x256xbf16>
    %cst_11 = arith.constant dense<0.000000e+00> : vector<16x256xf32>
    %16 = tpu.matmul %14, %15, %cst_11 {dimension_numbers = #tpu.dot_dimension_numbers<[1], [0], [0], [1], [0, 0, 1, 1], [], []>} : vector<16x32xbf16>, vector<32x256xbf16>, vector<16x256xf32> -> vector<16x256xf32>
    %17 = vector.broadcast %5 : vector<16x1xf32> to vector<16x256xf32>
    %18 = arith.addf %16, %17 : vector<16x256xf32>
    %19 = vector.extract_strided_slice %18 {offsets = [0, 0], sizes = [8, 256], strides = [1, 1]} : vector<16x256xf32> to vector<8x256xf32>
    %20 = vector.extract_strided_slice %18 {offsets = [8, 0], sizes = [8, 256], strides = [1, 1]} : vector<16x256xf32> to vector<8x256xf32>
    %cst_12 = arith.constant 0.000000e+00 : f32
    %21 = vector.broadcast %cst_12 : f32 to vector<8x256xf32>
    %22 = arith.maximumf %20, %21 : vector<8x256xf32>
    %23 = vector.broadcast %cst_12 : f32 to vector<8x256xf32>
    %24 = arith.subf %20, %23 : vector<8x256xf32>
    %25 = arith.cmpf one, %24, %24 : vector<8x256xf32>
    %26 = vector.broadcast %cst_12 : f32 to vector<8x256xf32>
    %27 = arith.addf %20, %26 : vector<8x256xf32>
    %28 = math.absf %24 : vector<8x256xf32>
    %cst_13 = arith.constant 0.000000e+00 : f32
    %29 = vector.broadcast %cst_13 : f32 to vector<8x256xf32>
    %30 = arith.subf %29, %28 : vector<8x256xf32>
    %31 = math.exp %30 : vector<8x256xf32>
    %32 = math.log1p %31 : vector<8x256xf32>
    %33 = arith.addf %22, %32 : vector<8x256xf32>
    %34 = arith.select %25, %27, %33 : vector<8x256xi1>, vector<8x256xf32>
    %35 = math.log %34 : vector<8x256xf32>
    %cst_14 = arith.constant dense<0.000000e+00> : vector<256xf32>
    %36 = vector.multi_reduction <add>, %1, %cst_14 [0] : vector<16x256xf32> to vector<256xf32>
    %37 = vector.shape_cast %36 : vector<256xf32> to vector<1x256xf32>
    %38 = vector.extract_strided_slice %2 {offsets = [0, 0], sizes = [8, 256], strides = [1, 1]} : vector<16x256xf32> to vector<8x256xf32>
    %39 = arith.mulf %34, %38 : vector<8x256xf32>
    %40 = arith.addf %19, %39 : vector<8x256xf32>
    %cst_15 = arith.constant -5.000000e-01 : f32
    %41 = vector.broadcast %cst_15 : f32 to vector<8x256xf32>
    %42 = arith.mulf %41, %38 : vector<8x256xf32>
    %43 = arith.mulf %42, %38 : vector<8x256xf32>
    %44 = arith.subf %43, %35 : vector<8x256xf32>
    %cst_16 = arith.constant dense<0.000000e+00> : vector<256xf32>
    %45 = vector.multi_reduction <add>, %44, %cst_16 [0] : vector<8x256xf32> to vector<256xf32>
    %46 = vector.shape_cast %45 : vector<256xf32> to vector<1x256xf32>
    %cst_17 = arith.constant 7.35150814 : f32
    %47 = vector.broadcast %cst_17 : f32 to vector<1x256xf32>
    %48 = arith.subf %46, %47 : vector<1x256xf32>
    %cst_18 = arith.constant 1.00000036 : f32
    %49 = vector.broadcast %cst_18 : f32 to vector<8x256xf32>
    %50 = arith.mulf %40, %49 : vector<8x256xf32>
    %cst_19 = arith.constant -5.000000e-01 : f32
    %51 = vector.broadcast %cst_19 : f32 to vector<8x256xf32>
    %52 = arith.mulf %51, %50 : vector<8x256xf32>
    %53 = arith.mulf %52, %50 : vector<8x256xf32>
    %cst_20 = arith.constant dense<0.000000e+00> : vector<256xf32>
    %54 = vector.multi_reduction <add>, %53, %cst_20 [0] : vector<8x256xf32> to vector<256xf32>
    %55 = vector.shape_cast %54 : vector<256xf32> to vector<1x256xf32>
    %cst_21 = arith.constant 7.35150576 : f32
    %56 = vector.broadcast %cst_21 : f32 to vector<1x256xf32>
    %57 = arith.subf %55, %56 : vector<1x256xf32>
    %58 = arith.subf %48, %57 : vector<1x256xf32>
    %c0_22 = arith.constant 0 : index
    %c0_23 = arith.constant 0 : index
    %59 = vector.load %arg6[%c0_22, %c0_23] : memref<32x8xbf16, #tpu.memory_space<vmem>>, vector<32x8xbf16>
    %60 = arith.truncf %40 : vector<8x256xf32> to vector<8x256xbf16>
    %cst_24 = arith.constant dense<0.000000e+00> : vector<32x256xf32>
    %61 = tpu.matmul %59, %60, %cst_24 {dimension_numbers = #tpu.dot_dimension_numbers<[1], [0], [0], [1], [0, 0, 1, 1], [], []>} : vector<32x8xbf16>, vector<8x256xbf16>, vector<32x256xf32> -> vector<32x256xf32>
    %62 = vector.broadcast %6 : vector<32x1xf32> to vector<32x256xf32>
    %63 = arith.addf %61, %62 : vector<32x256xf32>
    %64 = math.tanh %63 : vector<32x256xf32>
    %c0_25 = arith.constant 0 : index
    %c0_26 = arith.constant 0 : index
    %65 = vector.load %arg7[%c0_25, %c0_26] : memref<32x32xbf16, #tpu.memory_space<vmem>>, vector<32x32xbf16>
    %66 = arith.truncf %64 : vector<32x256xf32> to vector<32x256xbf16>
    %cst_27 = arith.constant dense<0.000000e+00> : vector<32x256xf32>
    %67 = tpu.matmul %65, %66, %cst_27 {dimension_numbers = #tpu.dot_dimension_numbers<[1], [0], [0], [1], [0, 0, 1, 1], [], []>} : vector<32x32xbf16>, vector<32x256xbf16>, vector<32x256xf32> -> vector<32x256xf32>
    %68 = vector.broadcast %7 : vector<32x1xf32> to vector<32x256xf32>
    %69 = arith.addf %67, %68 : vector<32x256xf32>
    %70 = vector.extract_strided_slice %69 {offsets = [0, 0], sizes = [16, 256], strides = [1, 1]} : vector<32x256xf32> to vector<16x256xf32>
    %71 = vector.extract_strided_slice %69 {offsets = [16, 0], sizes = [16, 256], strides = [1, 1]} : vector<32x256xf32> to vector<16x256xf32>
    %cst_28 = arith.constant 0.000000e+00 : f32
    %72 = vector.broadcast %cst_28 : f32 to vector<16x256xf32>
    %73 = arith.maximumf %71, %72 : vector<16x256xf32>
    %74 = vector.broadcast %cst_28 : f32 to vector<16x256xf32>
    %75 = arith.subf %71, %74 : vector<16x256xf32>
    %76 = arith.cmpf one, %75, %75 : vector<16x256xf32>
    %77 = vector.broadcast %cst_28 : f32 to vector<16x256xf32>
    %78 = arith.addf %71, %77 : vector<16x256xf32>
    %79 = math.absf %75 : vector<16x256xf32>
    %cst_29 = arith.constant 0.000000e+00 : f32
    %80 = vector.broadcast %cst_29 : f32 to vector<16x256xf32>
    %81 = arith.subf %80, %79 : vector<16x256xf32>
    %82 = math.exp %81 : vector<16x256xf32>
    %83 = math.log1p %82 : vector<16x256xf32>
    %84 = arith.addf %73, %83 : vector<16x256xf32>
    %85 = arith.select %76, %78, %84 : vector<16x256xi1>, vector<16x256xf32>
    %86 = arith.subf %0, %70 : vector<16x256xf32>
    %87 = arith.divf %86, %85 : vector<16x256xf32>
    %88 = arith.mulf %87, %87 : vector<16x256xf32>
    %89 = arith.mulf %88, %1 : vector<16x256xf32>
    %cst_30 = arith.constant dense<0.000000e+00> : vector<256xf32>
    %90 = vector.multi_reduction <add>, %89, %cst_30 [0] : vector<16x256xf32> to vector<256xf32>
    %91 = vector.shape_cast %90 : vector<256xf32> to vector<1x256xf32>
    %cst_31 = arith.constant 5.000000e-01 : f32
    %92 = vector.broadcast %cst_31 : f32 to vector<1x256xf32>
    %93 = arith.mulf %92, %91 : vector<1x256xf32>
    %94 = math.log %85 : vector<16x256xf32>
    %95 = arith.mulf %94, %1 : vector<16x256xf32>
    %cst_32 = arith.constant dense<0.000000e+00> : vector<256xf32>
    %96 = vector.multi_reduction <add>, %95, %cst_32 [0] : vector<16x256xf32> to vector<256xf32>
    %97 = vector.shape_cast %96 : vector<256xf32> to vector<1x256xf32>
    %98 = arith.addf %93, %97 : vector<1x256xf32>
    %cst_33 = arith.constant 0.918938517 : f32
    %99 = vector.broadcast %cst_33 : f32 to vector<1x256xf32>
    %100 = arith.mulf %99, %37 : vector<1x256xf32>
    %101 = arith.addf %98, %100 : vector<1x256xf32>
    %102 = vector.extract_strided_slice %2 {offsets = [8, 0], sizes = [8, 256], strides = [1, 1]} : vector<16x256xf32> to vector<8x256xf32>
    %103 = arith.mulf %34, %102 : vector<8x256xf32>
    %104 = arith.addf %19, %103 : vector<8x256xf32>
    %cst_34 = arith.constant -5.000000e-01 : f32
    %105 = vector.broadcast %cst_34 : f32 to vector<8x256xf32>
    %106 = arith.mulf %105, %102 : vector<8x256xf32>
    %107 = arith.mulf %106, %102 : vector<8x256xf32>
    %108 = arith.subf %107, %35 : vector<8x256xf32>
    %cst_35 = arith.constant dense<0.000000e+00> : vector<256xf32>
    %109 = vector.multi_reduction <add>, %108, %cst_35 [0] : vector<8x256xf32> to vector<256xf32>
    %110 = vector.shape_cast %109 : vector<256xf32> to vector<1x256xf32>
    %cst_36 = arith.constant 7.35150814 : f32
    %111 = vector.broadcast %cst_36 : f32 to vector<1x256xf32>
    %112 = arith.subf %110, %111 : vector<1x256xf32>
    %cst_37 = arith.constant 1.00000036 : f32
    %113 = vector.broadcast %cst_37 : f32 to vector<8x256xf32>
    %114 = arith.mulf %104, %113 : vector<8x256xf32>
    %cst_38 = arith.constant -5.000000e-01 : f32
    %115 = vector.broadcast %cst_38 : f32 to vector<8x256xf32>
    %116 = arith.mulf %115, %114 : vector<8x256xf32>
    %117 = arith.mulf %116, %114 : vector<8x256xf32>
    %cst_39 = arith.constant dense<0.000000e+00> : vector<256xf32>
    %118 = vector.multi_reduction <add>, %117, %cst_39 [0] : vector<8x256xf32> to vector<256xf32>
    %119 = vector.shape_cast %118 : vector<256xf32> to vector<1x256xf32>
    %cst_40 = arith.constant 7.35150576 : f32
    %120 = vector.broadcast %cst_40 : f32 to vector<1x256xf32>
    %121 = arith.subf %119, %120 : vector<1x256xf32>
    %122 = arith.subf %112, %121 : vector<1x256xf32>
    %c0_41 = arith.constant 0 : index
    %c0_42 = arith.constant 0 : index
    %123 = vector.load %arg6[%c0_41, %c0_42] : memref<32x8xbf16, #tpu.memory_space<vmem>>, vector<32x8xbf16>
    %124 = arith.truncf %104 : vector<8x256xf32> to vector<8x256xbf16>
    %cst_43 = arith.constant dense<0.000000e+00> : vector<32x256xf32>
    %125 = tpu.matmul %123, %124, %cst_43 {dimension_numbers = #tpu.dot_dimension_numbers<[1], [0], [0], [1], [0, 0, 1, 1], [], []>} : vector<32x8xbf16>, vector<8x256xbf16>, vector<32x256xf32> -> vector<32x256xf32>
    %126 = vector.broadcast %6 : vector<32x1xf32> to vector<32x256xf32>
    %127 = arith.addf %125, %126 : vector<32x256xf32>
    %128 = math.tanh %127 : vector<32x256xf32>
    %c0_44 = arith.constant 0 : index
    %c0_45 = arith.constant 0 : index
    %129 = vector.load %arg7[%c0_44, %c0_45] : memref<32x32xbf16, #tpu.memory_space<vmem>>, vector<32x32xbf16>
    %130 = arith.truncf %128 : vector<32x256xf32> to vector<32x256xbf16>
    %cst_46 = arith.constant dense<0.000000e+00> : vector<32x256xf32>
    %131 = tpu.matmul %129, %130, %cst_46 {dimension_numbers = #tpu.dot_dimension_numbers<[1], [0], [0], [1], [0, 0, 1, 1], [], []>} : vector<32x32xbf16>, vector<32x256xbf16>, vector<32x256xf32> -> vector<32x256xf32>
    %132 = vector.broadcast %7 : vector<32x1xf32> to vector<32x256xf32>
    %133 = arith.addf %131, %132 : vector<32x256xf32>
    %134 = vector.extract_strided_slice %133 {offsets = [0, 0], sizes = [16, 256], strides = [1, 1]} : vector<32x256xf32> to vector<16x256xf32>
    %135 = vector.extract_strided_slice %133 {offsets = [16, 0], sizes = [16, 256], strides = [1, 1]} : vector<32x256xf32> to vector<16x256xf32>
    %cst_47 = arith.constant 0.000000e+00 : f32
    %136 = vector.broadcast %cst_47 : f32 to vector<16x256xf32>
    %137 = arith.maximumf %135, %136 : vector<16x256xf32>
    %138 = vector.broadcast %cst_47 : f32 to vector<16x256xf32>
    %139 = arith.subf %135, %138 : vector<16x256xf32>
    %140 = arith.cmpf one, %139, %139 : vector<16x256xf32>
    %141 = vector.broadcast %cst_47 : f32 to vector<16x256xf32>
    %142 = arith.addf %135, %141 : vector<16x256xf32>
    %143 = math.absf %139 : vector<16x256xf32>
    %cst_48 = arith.constant 0.000000e+00 : f32
    %144 = vector.broadcast %cst_48 : f32 to vector<16x256xf32>
    %145 = arith.subf %144, %143 : vector<16x256xf32>
    %146 = math.exp %145 : vector<16x256xf32>
    %147 = math.log1p %146 : vector<16x256xf32>
    %148 = arith.addf %137, %147 : vector<16x256xf32>
    %149 = arith.select %140, %142, %148 : vector<16x256xi1>, vector<16x256xf32>
    %150 = arith.subf %0, %134 : vector<16x256xf32>
    %151 = arith.divf %150, %149 : vector<16x256xf32>
    %152 = arith.mulf %151, %151 : vector<16x256xf32>
    %153 = arith.mulf %152, %1 : vector<16x256xf32>
    %cst_49 = arith.constant dense<0.000000e+00> : vector<256xf32>
    %154 = vector.multi_reduction <add>, %153, %cst_49 [0] : vector<16x256xf32> to vector<256xf32>
    %155 = vector.shape_cast %154 : vector<256xf32> to vector<1x256xf32>
    %cst_50 = arith.constant 5.000000e-01 : f32
    %156 = vector.broadcast %cst_50 : f32 to vector<1x256xf32>
    %157 = arith.mulf %156, %155 : vector<1x256xf32>
    %158 = math.log %149 : vector<16x256xf32>
    %159 = arith.mulf %158, %1 : vector<16x256xf32>
    %cst_51 = arith.constant dense<0.000000e+00> : vector<256xf32>
    %160 = vector.multi_reduction <add>, %159, %cst_51 [0] : vector<16x256xf32> to vector<256xf32>
    %161 = vector.shape_cast %160 : vector<256xf32> to vector<1x256xf32>
    %162 = arith.addf %157, %161 : vector<1x256xf32>
    %cst_52 = arith.constant 0.918938517 : f32
    %163 = vector.broadcast %cst_52 : f32 to vector<1x256xf32>
    %164 = arith.mulf %163, %37 : vector<1x256xf32>
    %165 = arith.addf %162, %164 : vector<1x256xf32>
    %166 = tpu.concatenate %101, %165, %58, %122 in 0 : vector<1x256xf32>, vector<1x256xf32>, vector<1x256xf32>, vector<1x256xf32> -> vector<4x256xf32>
    %c0_53 = arith.constant 0 : index
    %c0_54 = arith.constant 0 : index
    %167 = vector.load %arg9[%c0_53, %c0_54] : memref<4x256xf32, #tpu.memory_space<vmem>>, vector<4x256xf32>
    tpu.vector_store %arg9[%c0_53, %c0_54], %166 {strides = array<i32>} : memref<4x256xf32, #tpu.memory_space<vmem>>, vector<4x256xf32>,
    return
  }
  func.func @transform_0(%arg0: i32) -> (i32, i32) {
    %c0_i32 = arith.constant 0 : i32
    %c0_i32_0 = arith.constant 0 : i32
    return %c0_i32, %arg0 : i32, i32
  }
  func.func @transform_1(%arg0: i32) -> (i32, i32) {
    %c0_i32 = arith.constant 0 : i32
    %c0_i32_0 = arith.constant 0 : i32
    return %c0_i32, %arg0 : i32, i32
  }
  func.func @transform_2(%arg0: i32) -> (i32, i32) {
    %c0_i32 = arith.constant 0 : i32
    %c0_i32_0 = arith.constant 0 : i32
    return %c0_i32, %arg0 : i32, i32
  }
  func.func @transform_3(%arg0: i32) -> (i32, i32) {
    %c0_i32 = arith.constant 0 : i32
    %c0_i32_0 = arith.constant 0 : i32
    %c0_i32_1 = arith.constant 0 : i32
    return %c0_i32, %c0_i32_0 : i32, i32
  }
  func.func @transform_4(%arg0: i32) -> (i32, i32) {
    %c0_i32 = arith.constant 0 : i32
    %c0_i32_0 = arith.constant 0 : i32
    %c0_i32_1 = arith.constant 0 : i32
    return %c0_i32, %c0_i32_0 : i32, i32
  }
  func.func @transform_5(%arg0: i32) -> (i32, i32) {
    %c0_i32 = arith.constant 0 : i32
    %c0_i32_0 = arith.constant 0 : i32
    %c0_i32_1 = arith.constant 0 : i32
    return %c0_i32, %c0_i32_0 : i32, i32
  }
  func.func @transform_6(%arg0: i32) -> (i32, i32) {
    %c0_i32 = arith.constant 0 : i32
    %c0_i32_0 = arith.constant 0 : i32
    %c0_i32_1 = arith.constant 0 : i32
    return %c0_i32, %c0_i32_0 : i32, i32
  }
  func.func @transform_7(%arg0: i32) -> (i32, i32) {
    %c0_i32 = arith.constant 0 : i32
    %c0_i32_0 = arith.constant 0 : i32
    %c0_i32_1 = arith.constant 0 : i32
    return %c0_i32, %c0_i32_0 : i32, i32
  }
  func.func @transform_8(%arg0: i32) -> (i32, i32) {
    %c0_i32 = arith.constant 0 : i32
    %c0_i32_0 = arith.constant 0 : i32
    return %c0_i32, %arg0 : i32, i32
  }
}

</mosaic_0001>

<bundles_post_ra>
// kernel: vae_forward.1
= control target key start
LH: loop header
LB: loop body
LE: loop exit
PB: predicated region body
PF: predicated region fallthrough
CT: control target
= control target key end

     0   :  { %v1170_v3 = vmov 0   ;;  %vm92_vm0 = vcmask 130048   ;;  %vm181_vm1 = vcmask 261120   ;;  %vm371_vm6 = vcmask 1043456   ;;  %s1567_s0 = inlined_call_operand.vmem [shape: f32[16,256], index: 0, kind: input, shape index: {}]   ;;  %s1568_s3 = inlined_call_operand.vmem [shape: bf16[32,16], index: 3, kind: input, shape index: {}]   ;;  %s1569_s7 = inlined_call_operand.vmem [shape: f32[112,1], index: 7, kind: input, shape index: {}]   ;;  %s1570_s4 = inlined_call_operand.vmem [shape: bf16[16,32], index: 4, kind: input, shape index: {}]   ;;  %s1571_s5 = inlined_call_operand.vmem [shape: bf16[32,8], index: 5, kind: input, shape index: {}]   ;;  %s1572_s2 = inlined_call_operand.vmem [shape: f32[16,256], index: 2, kind: input, shape index: {}]   ;;  %s1573_s6 = inlined_call_operand.vmem [shape: bf16[32,32], index: 6, kind: input, shape index: {}]   ;;  %s1574_s1 = inlined_call_operand.vmem [shape: f32[16,256], index: 1, kind: input, shape index: {}]   ;;  %s1575_s8 = inlined_call_operand.vmem [shape: f32[4,256], index: 8, kind: output, shape index: {}]  }
   0x1   :  { %v31_v0 = vld [vmem:[%s1567_s0 + $0x8] sm:$0xff]  ;;  %v33_v1 = vld [vmem:[%s1567_s0 + $0x18] sm:$0xff]  ;;  %v30_v2 = vld [vmem:[%s1567_s0] sm:$0xff]  ;;  %131 = vmatprep.mubr.bf16.mxu0 %v1170_v3  ;;  %1033 = vset.pattern.permute.xlu0 %v1170_v3  ;;  %vm364_vm7 = vcmask 64512  }
   0x2   :  { %v61_v4 = vpack.c.bf16 %v33_v1, %v31_v0  ;;  %v32_v5 = vld [vmem:[%s1567_s0 + $0x10] sm:$0xff]  ;;  %1034 = vset.pattern.permute.xlu1 %v1170_v3  ;;  %217 = vmatprep.mubr.bf16.mxu1 %v1170_v3  ;;  %v1035_v7 = vld [vmem:[%s1568_s3] sm:$0xff]   ;;  %v45_v10 = vld [vmem:[%s1569_s7 + $0x18] sm:$0xff] }
   0x3   :  { %v60_v6 = vpack.c.bf16 %v32_v5, %v30_v2  ;;  %v44_v8 = vld [vmem:[%s1569_s7 + $0x10] sm:$0xff]  ;;  %v42_v9 = vld [vmem:[%s1569_s7] sm:$0xff]  ;;  %v43_v11 = vld [vmem:[%s1569_s7 + $0x8] sm:$0xff] }
   0x4   :  { %113 = vmatprep.subr.bf16.mxu0 %v61_v4  ;;  %74 = vperm.xlu0 %1033, %v44_v8   ;;  %v47_v12 = vld [vmem:[%s1569_s7 + $0x28] sm:$0xff]  ;;  %v46_v13 = vld [vmem:[%s1569_s7 + $0x20] sm:$0xff]  ;;  %v48_v17 = vld [vmem:[%s1569_s7 + $0x30] sm:$0xff] }
   0x5   :  { %114 = vmatpush1.bf16.msra.mxu0 %v60_v6  ;;  %64 = vperm.xlu1 %1034, %v42_v9   ;;  %v1036_v14 = vld [vmem:[%s1568_s3 + $0x8] sm:$0xff]   ;;  %v50_v15 = vld [vmem:[%s1569_s7 + $0x40] sm:$0xff]  ;;  %v49_v18 = vld [vmem:[%s1569_s7 + $0x38] sm:$0xff] }
   0x6   :  { %v51_v16 = vld [vmem:[%s1569_s7 + $0x48] sm:$0xff]  ;;  %v54_v19 = vld [vmem:[%s1569_s7 + $0x60] sm:$0xff]  ;;  %v52_v21 = vld [vmem:[%s1569_s7 + $0x50] sm:$0xff] }
   0x7   :  { %v55_v20 = vld [vmem:[%s1569_s7 + $0x68] sm:$0xff]  ;;  %v53_v22 = vld [vmem:[%s1569_s7 + $0x58] sm:$0xff]  ;;  %v1037_v55 = vld [vmem:[%s1570_s4] sm:$0xff]  }
   0x8   :  { %1006 = vmatmul.mubr.msk.bf16.vlgmr.msra.gmra.mxu0 %vm92_vm0, %v1035_v7  ;;  %79 = vperm.xlu0 %1033, %v45_v10  }
   0x9   :  { %141 = vmatprep.mubr.bf16.mxu0 %v1170_v3  ;;  %69 = vperm.xlu1 %1034, %v43_v11  }
   0xc   :  { %173 = vperm.xlu0 %1033, %v47_v12  }
   0xd   :  { %168 = vperm.xlu1 %1034, %v46_v13  }
  0x10   :  { %1007 = vmatmul.mubr.msk.bf16.gmra.mxu0 %vm92_vm0, %v1036_v14  ;;  %346 = vperm.xlu0 %1033, %v50_v15  }
  0x11   :  { %515 = vmatprep.mubr.bf16.mxu0 %v1170_v3  ;;  %351 = vperm.xlu1 %1034, %v51_v16  }
  0x14   :  { %336 = vperm.xlu0 %1033, %v48_v17  }
  0x15   :  { %341 = vperm.xlu1 %1034, %v49_v18  }
  0x18   :  { %459 = vperm.xlu0 %1033, %v54_v19  }
  0x19   :  { %464 = vperm.xlu1 %1034, %v55_v20  }
  0x1c   :  { %449 = vperm.xlu0 %1033, %v52_v21  }
  0x1d   :  { %454 = vperm.xlu1 %1034, %v53_v22  }
  0x7f   :  { %v75_v27 = vpop.permute.xlu0 %74 }
  0x80   :  { %v65_v25 = vpop.permute.xlu1 %64 }
  0x83   :  { %v80_v34 = vpop.permute.xlu0 %79 }
  0x84   :  { %v70_v30 = vpop.permute.xlu1 %69 }
  0x87   :  { %v174_v58 = vpop.permute.xlu0 %173 }
  0xc8   :  { %v133_v23 = vpop.f32.mrf.mxu0 }
  0xc9   :  { %v134_v42 = vadd.f32 %v133_v23, %v65_v25 }
  0xca   :  { %v135_v24 = vpop.f32.mrf.mxu0 }
  0xcb   :  { %v136_v39 = vadd.f32 %v135_v24, %v65_v25 }
  0xcc   :  { %v137_v26 = vpop.f32.mrf.mxu0 }
  0xcd   :  { %v138_v41 = vadd.f32 %v137_v26, %v70_v30  ;;  %v38_v26 = vld [vmem:[%s1572_s2] sm:$0xff] }
  0xce   :  { %v139_v28 = vpop.f32.mrf.mxu0 }
  0xcf   :  { %v140_v31 = vadd.f32 %v139_v28, %v70_v30  ;;  %v169_v28 = vpop.permute.xlu1 %168 }
  0xd0   :  { %v143_v29 = vpop.f32.mrf.mxu0 }
  0xd1   :  { %1042 = vtanh.f32 %v140_v31  ;;  %v144_v37 = vadd.f32 %v143_v29, %v75_v27 }
  0xd2   :  { %v145_v32 = vpop.f32.mrf.mxu0 }
  0xd3   :  { %v146_v33 = vadd.f32 %v145_v32, %v75_v27  ;;  %v40_v27 = vld [vmem:[%s1572_s2 + $0x10] sm:$0xff]  ;;  %v39_v32 = vld [vmem:[%s1572_s2 + $0x8] sm:$0xff] }
  0xd4   :  { %v147_v35 = vpop.f32.mrf.mxu0 }
  0xd5   :  { %v148_v36 = vadd.f32 %v147_v35, %v80_v34  ;;  %1044 = vtanh.f32 %v146_v33  ;;  %v41_v33 = vld [vmem:[%s1572_s2 + $0x18] sm:$0xff] }
  0xd6   :  { %v149_v38 = vpop.f32.mrf.mxu0 }
  0xd7   :  { %v150_v40 = vadd.f32 %v149_v38, %v80_v34  ;;  %1046 = vtanh.f32 %v148_v36 }
  0xd9   :  { %1048 = vtanh.f32 %v150_v40 }
  0xda   :  { %1050 = vtanh.f32 %v144_v37 }
  0xdb   :  { %1052 = vtanh.f32 %v136_v39 }
  0xdc   :  { %1054 = vtanh.f32 %v138_v41 }
  0xdd   :  { %1056 = vtanh.f32 %v134_v42 }
  0xde   :  { %v1043_v43 = vpop.eup %1042 }
  0xe2   :  { %v1045_v44 = vpop.eup %1044 }
  0xe4   :  { %v1047_v45 = vpop.eup %1046 }
  0xe6   :  { %v1049_v46 = vpop.eup %1048 }
  0xe7   :  { %v1051_v47 = vpop.eup %1050  ;;  %v165_v48 = vpack.c.bf16 %v1049_v46, %v1045_v44 }
  0xe8   :  { %v1053_v49 = vpop.eup %1052  ;;  %v164_v50 = vpack.c.bf16 %v1047_v45, %v1051_v47 }
  0xe9   :  { %v1055_v51 = vpop.eup %1054  ;;  %197 = vmatprep.subr.bf16.mxu1 %v165_v48  ;;  %v163_v52 = vpack.c.bf16 %v1043_v43, %v1053_v49 }
  0xea   :  { %198 = vmatpush1.bf16.msra.mxu1 %v164_v50  ;;  %v1057_v53 = vpop.eup %1056 }
  0xeb   :  { %199 = vmatprep.subr.bf16.mxu1 %v163_v52  ;;  %v162_v54 = vpack.c.bf16 %v1055_v51, %v1057_v53  ;;  %v286_v51 = vmul.f32 -0.5, %v38_v26 }
  0xee   :  { %200 = vmatpush1.bf16.msra.mxu1 %v162_v54 }
  0xf1   :  { %1009 = vmatmul.mubr.msk.bf16.vlgmr.msra.gmra.mxu1 %vm181_vm1, %v1037_v55 }
  0xf2   :  { %410 = vmatprep.mubr.bf16.mxu1 %v1170_v3 }
 0x1b1   :  { %v219_v56 = vpop.f32.mrf.mxu1 }
 0x1b2   :  { %v220_v30 = vadd.f32 %v219_v56, %v169_v28 }
 0x1b3   :  { %v221_v57 = vpop.f32.mrf.mxu1 }
 0x1b4   :  { %v222_v37 = vadd.f32 %v221_v57, %v169_v28 }
 0x1b5   :  { %v223_v59 = vpop.f32.mrf.mxu1 }
 0x1b6   :  { %v224_v60 = vadd.f32 %v223_v59, %v174_v58  ;;  %v1306_v59 = vld [vmem:[%s1571_s5] sm:$0xff]  }
 0x1b7   :  { %v225_v61 = vpop.f32.mrf.mxu1 }
 0x1b8   :  { %v234_v62 = vand.u32 2147483647, %v224_v60  ;;  %v226_v63 = vadd.f32 %v225_v61, %v174_v58  ;;  %v228_v20 = vmax.f32 %v224_v60, 0.0  ;;  %vm230_vm4 = vcmp.ne.f32.partialorder %v224_v60, %v224_v60 }
 0x1ba   :  { %v236_v0 = vsub.f32 0.0, %v234_v62  ;;  %v235_v1 = vand.u32 2147483647, %v226_v63  ;;  %v229_v25 = vmax.f32 %v226_v63, 0.0  ;;  %vm231_vm5 = vcmp.ne.f32.partialorder %v226_v63, %v226_v63 }
 0x1bb   :  { %v680_v62 = vmul.f32 -0.5, %v40_v27 }
 0x1bc   :  { %v238_v2 = vmul.f32 1.442695, %v236_v0  ;;  %v237_v4 = vsub.f32 0.0, %v235_v1  ;;  %v681_v0 = vmul.f32 -0.5, %v41_v33 }
 0x1be   :  { %1058 = vpow2.f32 %v238_v2  ;;  %v240_v5 = vmul.f32 1.442695, %v237_v4 }
 0x1c0   :  { %1060 = vpow2.f32 %v240_v5 }
 0x1cb   :  { %v1059_v6 = vpop.eup %1058 }
 0x1cc   :  { %v242_v7 = vadd.f32 1.0, %v1059_v6  ;;  %v245_v10 = vmul.f32 -0.5, %v1059_v6  ;;  %v248_v13 = vand.u32 2147483647, %v1059_v6 }
 0x1cd   :  { %v1061_v8 = vpop.eup %1060 }
 0x1ce   :  { %1062 = vlog2.f32 %v242_v7  ;;  %v251_v9 = vadd.f32 1.0, %v1061_v8  ;;  %v254_v11 = vmul.f32 -0.5, %v1061_v8  ;;  %v246_v12 = vadd.f32 1.0, %v245_v10 }
 0x1cf   :  { %v257_v16 = vand.u32 2147483647, %v1061_v8  ;;  %vm249_vm2 = vcmp.lt.f32.partialorder %v248_v13, 0.0004427343  ;;  %v288_v7 = vmul.f32 %v286_v51, %v38_v26  ;;  %v682_v13 = vmul.f32 %v680_v62, %v40_v27 }
 0x1d0   :  { %1064 = vlog2.f32 %v251_v9  ;;  %v255_v14 = vadd.f32 1.0, %v254_v11  ;;  %v247_v18 = vmul.f32 %v1059_v6, %v246_v12 }
 0x1d1   :  { %vm258_vm3 = vcmp.lt.f32.partialorder %v257_v16, 0.0004427343  ;;  %v683_v16 = vmul.f32 %v681_v0, %v41_v33 }
 0x1d2   :  { %v256_v23 = vmul.f32 %v1061_v8, %v255_v14 }
 0x1db   :  { %v1063_v15 = vpop.eup %1062 }
 0x1dc   :  { %v244_v17 = vmul.f32 0.6931472, %v1063_v15 }
 0x1dd   :  { %v1065_v19 = vpop.eup %1064 }
 0x1de   :  { %v250_v21 = vsel %vm249_vm2, %v247_v18, %v244_v17  ;;  %v253_v22 = vmul.f32 0.6931472, %v1065_v19 }
 0x1df   :  { %v260_v24 = vadd.f32 %v250_v21, %v228_v20 }
 0x1e0   :  { %v259_v29 = vsel %vm258_vm3, %v256_v23, %v253_v22 }
 0x1e1   :  { %v262_v31 = vsel %vm230_vm4, %v224_v60, %v260_v24  ;;  %v261_v34 = vadd.f32 %v259_v29, %v229_v25  ;;  %v287_v60 = vmul.f32 -0.5, %v39_v32  ;;  %v1039_v25 = vld [vmem:[%s1571_s5 + $0x8] sm:$0xff]  }
 0x1e2   :  { %1066 = vlog2.f32 %v262_v31  ;;  %v282_v35 = vmul.f32 %v262_v31, %v38_v26  ;;  %v676_v36 = vmul.f32 %v262_v31, %v40_v27 }
 0x1e3   :  { %v263_v38 = vsel %vm231_vm5, %v226_v63, %v261_v34  ;;  %v289_v11 = vmul.f32 %v287_v60, %v39_v32 }
 0x1e4   :  { %1068 = vlog2.f32 %v263_v38  ;;  %v283_v39 = vmul.f32 %v263_v38, %v39_v32  ;;  %v677_v40 = vmul.f32 %v263_v38, %v41_v33  ;;  %v284_v41 = vadd.f32 %v282_v35, %v220_v30 }
 0x1e5   :  { %v678_v42 = vadd.f32 %v676_v36, %v220_v30 }
 0x1e6   :  { %v285_v43 = vadd.f32 %v283_v39, %v222_v37  ;;  %v306_v44 = vmul.f32 1.0000004, %v284_v41  ;;  %v332_v45 = vpack.c.bf16 %v284_v41, %v284_v41  ;;  %v679_v46 = vadd.f32 %v677_v40, %v222_v37 }
 0x1e7   :  { %v700_v47 = vmul.f32 1.0000004, %v678_v42  ;;  %v722_v54 = vpack.c.bf16 %v678_v42, %v678_v42 }
 0x1e8   :  { %v307_v48 = vmul.f32 1.0000004, %v285_v43  ;;  %v333_v49 = vpack.c.bf16 %v285_v43, %v285_v43  ;;  %v308_v50 = vmul.f32 -0.5, %v306_v44  ;;  %v701_v52 = vmul.f32 1.0000004, %v679_v46 }
 0x1e9   :  { %v702_v53 = vmul.f32 -0.5, %v700_v47  ;;  %v373_v57 = vsel %vm371_vm6, %v332_v45, 0  ;;  %v723_v58 = vpack.c.bf16 %v679_v46, %v679_v46  ;;  %v725_v9 = vsel %vm371_vm6, %v722_v54, 0 }
 0x1ea   :  { %v309_v55 = vmul.f32 -0.5, %v307_v48  ;;  %1016 = vmatprep.subr.msk.bf16.mxu1 %vm371_vm6, %v333_v49  ;;  %v310_v56 = vmul.f32 %v308_v50, %v306_v44  ;;  %v703_v61 = vmul.f32 -0.5, %v701_v52 }
 0x1eb   :  { %393 = vmatpush1.bf16.msra.mxu1 %v373_v57  ;;  %v704_v63 = vmul.f32 %v702_v53, %v700_v47 }
 0x1ec   :  { %v311_v1 = vmul.f32 %v309_v55, %v307_v48  ;;  %v312_v2 = vrot.slane %v310_v56, 4  ;;  %1027 = vmatprep.subr.msk.bf16.mxu1 %vm371_vm6, %v723_v58  ;;  %v705_v4 = vmul.f32 %v703_v61, %v701_v52 }
 0x1ed   :  { %v706_v5 = vrot.slane %v704_v63, 4 }
 0x1ee   :  { %v318_v6 = vrot.slane %v311_v1, 4  ;;  %v313_v8 = vadd.f32 %v312_v2, %v310_v56  ;;  %1017 = vmatmul.mubr.msk.bf16.vlgmr.msra.gmra.mxu1 %vm364_vm7, %v1306_v59  ;;  %v712_v12 = vrot.slane %v705_v4, 4 }
 0x1ef   :  { %v1067_v10 = vpop.eup %1066  ;;  %v707_v14 = vadd.f32 %v706_v5, %v704_v63  ;;  %745 = vmatpush1.bf16.msra.mxu1 %v725_v9  ;;  %420 = vmatprep.mubr.bf16.mxu1 %v1170_v3 }
 0x1f0   :  { %v265_v15 = vmul.f32 0.6931472, %v1067_v10  ;;  %v319_v17 = vadd.f32 %v318_v6, %v311_v1  ;;  %v314_v18 = vrot.slane %v313_v8, 2  ;;  %v713_v20 = vadd.f32 %v712_v12, %v705_v4 }
 0x1f1   :  { %v1069_v19 = vpop.eup %1068  ;;  %v708_v21 = vrot.slane %v707_v14, 2 }
 0x1f2   :  { %v267_v22 = vmul.f32 0.6931472, %v1069_v19  ;;  %v320_v23 = vrot.slane %v319_v17, 2  ;;  %v290_v24 = vsub.f32 %v288_v7, %v265_v15  ;;  %v714_v26 = vrot.slane %v713_v20, 2 }
 0x1f3   :  { %v684_v27 = vsub.f32 %v682_v13, %v265_v15  ;;  %v315_v31 = vadd.f32 %v314_v18, %v313_v8  ;;  %v709_v34 = vadd.f32 %v708_v21, %v707_v14 }
 0x1f4   :  { %v291_v28 = vsub.f32 %v289_v11, %v267_v22  ;;  %v685_v29 = vsub.f32 %v683_v16, %v267_v22  ;;  %v292_v30 = vrot.slane %v290_v24, 4  ;;  %v321_v32 = vadd.f32 %v320_v23, %v319_v17  ;;  %v352_v17 = vpop.permute.xlu1 %351 }
 0x1f5   :  { %v686_v33 = vrot.slane %v684_v27, 4  ;;  %v715_v38 = vadd.f32 %v714_v26, %v713_v20  ;;  %v316_v43 = vrot.slane %v315_v31, 1  ;;  %v710_v46 = vrot.slane %v709_v34, 1  ;;  %v347_v20 = vpop.permute.xlu0 %346 }
 0x1f6   :  { %v298_v35 = vrot.slane %v291_v28, 4  ;;  %v692_v36 = vrot.slane %v685_v29, 4  ;;  %v293_v37 = vadd.f32 %v292_v30, %v290_v24  ;;  %1018 = vmatmul.mubr.msk.bf16.gmra.mxu1 %vm364_vm7, %v1039_v25  ;;  %v322_v44 = vrot.slane %v321_v32, 1 }
 0x1f7   :  { %v687_v39 = vadd.f32 %v686_v33, %v684_v27  ;;  %762 = vmatprep.mubr.bf16.mxu1 %v1170_v3  ;;  %v716_v50 = vrot.slane %v715_v38, 1  ;;  %v317_v55 = vadd.f32 %v316_v43, %v315_v31  ;;  %v711_v58 = vadd.f32 %v710_v46, %v709_v34 }
 0x1f8   :  { %v299_v40 = vadd.f32 %v298_v35, %v291_v28  ;;  %v693_v41 = vadd.f32 %v692_v36, %v685_v29  ;;  %v294_v42 = vrot.slane %v293_v37, 2  ;;  %v323_v56 = vadd.f32 %v322_v44, %v321_v32  ;;  %v342_v22 = vpop.permute.xlu1 %341 }
 0x1f9   :  { %v688_v45 = vrot.slane %v687_v39, 2  ;;  %v717_v63 = vadd.f32 %v716_v50, %v715_v38  ;;  %v1323_v5 = vadd.f32 -7.3515058, %v317_v55  ;;  %v1329_v8 = vadd.f32 -7.3515058, %v711_v58  ;;  %v337_v29 = vpop.permute.xlu0 %336 }
 0x1fa   :  { %v300_v47 = vrot.slane %v299_v40, 2  ;;  %v694_v48 = vrot.slane %v693_v41, 2  ;;  %v295_v49 = vadd.f32 %v294_v42, %v293_v37  ;;  %v1325_v6 = vadd.f32 -7.3515058, %v323_v56 }
 0x1fb   :  { %v689_v51 = vadd.f32 %v688_v45, %v687_v39  ;;  %v1337_v11 = vadd.f32 -7.3515058, %v717_v63 }
 0x1fc   :  { %v301_v52 = vadd.f32 %v300_v47, %v299_v40  ;;  %v695_v53 = vadd.f32 %v694_v48, %v693_v41  ;;  %v296_v54 = vrot.slane %v295_v49, 1 }
 0x1fd   :  { %v690_v57 = vrot.slane %v689_v51, 1 }
 0x1fe   :  { %v302_v60 = vrot.slane %v301_v52, 1  ;;  %v696_v61 = vrot.slane %v695_v53, 1  ;;  %v297_v62 = vadd.f32 %v296_v54, %v295_v49  ;;  %1028 = vmatmul.mubr.msk.bf16.vlgmr.msra.gmra.mxu1 %vm364_vm7, %v1306_v59 }
 0x1ff   :  { %v691_v0 = vadd.f32 %v690_v57, %v689_v51  ;;  %772 = vmatprep.mubr.bf16.mxu1 %v1170_v3 }
 0x200   :  { %v303_v1 = vadd.f32 %v302_v60, %v301_v52  ;;  %v697_v2 = vadd.f32 %v696_v61, %v695_v53  ;;  %v1321_v4 = vadd.f32 -7.351508, %v297_v62 }
 0x201   :  { %v1327_v7 = vadd.f32 -7.351508, %v691_v0  ;;  %v1040_v0 = vld [vmem:[%s1573_s6] sm:$0xff]  }
 0x202   :  { %v1331_v9 = vadd.f32 -7.351508, %v303_v1  ;;  %v1333_v10 = vadd.f32 -7.351508, %v697_v2  ;;  %v326_v59 = vsub.f32 %v1321_v4, %v1323_v5 }
 0x203   :  { %v720_v12 = vsub.f32 %v1327_v7, %v1329_v8 }
 0x204   :  { %v327_v13 = vsub.f32 %v1331_v9, %v1325_v6  ;;  %v721_v14 = vsub.f32 %v1333_v10, %v1337_v11 }
 0x206   :  { %1029 = vmatmul.mubr.msk.bf16.gmra.mxu1 %vm364_vm7, %v1039_v25 }
 0x2ae   :  { %v412_v15 = vpop.f32.mrf.mxu1 }
 0x2af   :  { %v413_v35 = vadd.f32 %v412_v15, %v337_v29 }
 0x2b0   :  { %v414_v16 = vpop.f32.mrf.mxu1 }
 0x2b1   :  { %v415_v32 = vadd.f32 %v414_v16, %v337_v29  ;;  %v1041_v16 = vld [vmem:[%s1573_s6 + $0x8] sm:$0xff]  }
 0x2b2   :  { %v416_v18 = vpop.f32.mrf.mxu1 }
 0x2b3   :  { %v417_v33 = vadd.f32 %v416_v18, %v342_v22 }
 0x2b4   :  { %v418_v19 = vpop.f32.mrf.mxu1 }
 0x2b5   :  { %v419_v23 = vadd.f32 %v418_v19, %v342_v22 }
 0x2b6   :  { %v422_v21 = vpop.f32.mrf.mxu1 }
 0x2b7   :  { %1070 = vtanh.f32 %v419_v23  ;;  %v423_v30 = vadd.f32 %v422_v21, %v347_v20 }
 0x2b8   :  { %v424_v24 = vpop.f32.mrf.mxu1 }
 0x2b9   :  { %v425_v26 = vadd.f32 %v424_v24, %v347_v20 }
 0x2ba   :  { %v426_v27 = vpop.f32.mrf.mxu1 }
 0x2bb   :  { %v427_v28 = vadd.f32 %v426_v27, %v352_v17  ;;  %1072 = vtanh.f32 %v425_v26 }
 0x2bc   :  { %v428_v31 = vpop.f32.mrf.mxu1 }
 0x2bd   :  { %v429_v25 = vadd.f32 %v428_v31, %v352_v17  ;;  %1074 = vtanh.f32 %v427_v28  ;;  %v460_v31 = vpop.permute.xlu0 %459 }
 0x2be   :  { %v764_v34 = vpop.f32.mrf.mxu1 }
 0x2bf   :  { %1076 = vtanh.f32 %v429_v25  ;;  %v765_v61 = vadd.f32 %v764_v34, %v337_v29 }
 0x2c0   :  { %1078 = vtanh.f32 %v423_v30  ;;  %v766_v36 = vpop.f32.mrf.mxu1 }
 0x2c1   :  { %1080 = vtanh.f32 %v415_v32  ;;  %v767_v52 = vadd.f32 %v766_v36, %v337_v29  ;;  %v465_v36 = vpop.permute.xlu1 %464 }
 0x2c2   :  { %1082 = vtanh.f32 %v417_v33  ;;  %v768_v37 = vpop.f32.mrf.mxu1 }
 0x2c3   :  { %1084 = vtanh.f32 %v413_v35  ;;  %v769_v56 = vadd.f32 %v768_v37, %v342_v22 }
 0x2c4   :  { %v770_v38 = vpop.f32.mrf.mxu1  ;;  %v1071_v42 = vpop.eup %1070 }
 0x2c5   :  { %v771_v40 = vadd.f32 %v770_v38, %v342_v22 }
 0x2c6   :  { %v774_v39 = vpop.f32.mrf.mxu1 }
 0x2c7   :  { %1086 = vtanh.f32 %v771_v40  ;;  %v775_v49 = vadd.f32 %v774_v39, %v347_v20 }
 0x2c8   :  { %v776_v41 = vpop.f32.mrf.mxu1  ;;  %v1073_v44 = vpop.eup %1072 }
 0x2c9   :  { %v777_v43 = vadd.f32 %v776_v41, %v347_v20 }
 0x2ca   :  { %v778_v45 = vpop.f32.mrf.mxu1  ;;  %v1075_v46 = vpop.eup %1074 }
 0x2cb   :  { %v779_v47 = vadd.f32 %v778_v45, %v352_v17  ;;  %1088 = vtanh.f32 %v777_v43 }
 0x2cc   :  { %v1077_v48 = vpop.eup %1076  ;;  %v780_v50 = vpop.f32.mrf.mxu1 }
 0x2cd   :  { %v1079_v51 = vpop.eup %1078  ;;  %v781_v53 = vadd.f32 %v780_v50, %v352_v17  ;;  %v446_v54 = vpack.c.bf16 %v1077_v48, %v1073_v44  ;;  %1090 = vtanh.f32 %v779_v47 }
 0x2ce   :  { %v1081_v55 = vpop.eup %1080  ;;  %v445_v57 = vpack.c.bf16 %v1075_v46, %v1079_v51 }
 0x2cf   :  { %v1083_v58 = vpop.eup %1082  ;;  %1092 = vtanh.f32 %v781_v53  ;;  %495 = vmatprep.subr.bf16.mxu0 %v446_v54  ;;  %v444_v60 = vpack.c.bf16 %v1071_v42, %v1081_v55 }
 0x2d0   :  { %1094 = vtanh.f32 %v775_v49  ;;  %496 = vmatpush1.bf16.msra.mxu0 %v445_v57  ;;  %v1085_v62 = vpop.eup %1084 }
 0x2d1   :  { %1096 = vtanh.f32 %v767_v52  ;;  %497 = vmatprep.subr.bf16.mxu0 %v444_v60  ;;  %v443_v63 = vpack.c.bf16 %v1083_v58, %v1085_v62 }
 0x2d2   :  { %1098 = vtanh.f32 %v769_v56 }
 0x2d3   :  { %1100 = vtanh.f32 %v765_v61 }
 0x2d4   :  { %498 = vmatpush1.bf16.msra.mxu0 %v443_v63  ;;  %v1087_v1 = vpop.eup %1086 }
 0x2d7   :  { %1021 = vmatmul.mubr.msk.bf16.vlgmr.msra.gmra.mxu0 %vm181_vm1, %v1040_v0 }
 0x2d8   :  { %525 = vmatprep.mubr.bf16.mxu0 %v1170_v3  ;;  %v1089_v2 = vpop.eup %1088 }
 0x2da   :  { %v1091_v15 = vpop.eup %1090 }
 0x2dc   :  { %v1093_v17 = vpop.eup %1092 }
 0x2dd   :  { %v1095_v18 = vpop.eup %1094  ;;  %v794_v19 = vpack.c.bf16 %v1093_v17, %v1089_v2 }
 0x2de   :  { %v1097_v20 = vpop.eup %1096  ;;  %v793_v21 = vpack.c.bf16 %v1091_v15, %v1095_v18 }
 0x2df   :  { %v1099_v22 = vpop.eup %1098  ;;  %1022 = vmatmul.mubr.msk.bf16.gmra.mxu0 %vm181_vm1, %v1041_v16  ;;  %807 = vmatprep.subr.bf16.mxu0 %v794_v19  ;;  %v792_v23 = vpack.c.bf16 %v1087_v1, %v1097_v20 }
 0x2e0   :  { %808 = vmatpush1.bf16.msra.mxu0 %v793_v21  ;;  %827 = vmatprep.mubr.bf16.mxu0 %v1170_v3  ;;  %v1101_v24 = vpop.eup %1100 }
 0x2e1   :  { %809 = vmatprep.subr.bf16.mxu0 %v792_v23  ;;  %v791_v26 = vpack.c.bf16 %v1099_v22, %v1101_v24 }
 0x2e4   :  { %810 = vmatpush1.bf16.msra.mxu0 %v791_v26 }
 0x2e7   :  { %1030 = vmatmul.mubr.msk.bf16.vlgmr.msra.gmra.mxu0 %vm181_vm1, %v1040_v0 }
 0x2e8   :  { %837 = vmatprep.mubr.bf16.mxu0 %v1170_v3 }
 0x2ef   :  { %1031 = vmatmul.mubr.msk.bf16.gmra.mxu0 %vm181_vm1, %v1041_v16 }
 0x397   :  { %v1359_v27 = vpop.f32.mrf.mxu0 }
 0x399   :  { %v1361_v28 = vpop.f32.mrf.mxu0 }
 0x39b   :  { %v1363_v29 = vpop.f32.mrf.mxu0 }
 0x39d   :  { %v1365_v30 = vpop.f32.mrf.mxu0 }
 0x39f   :  { %v527_v32 = vpop.f32.mrf.mxu0 }
 0x3a0   :  { %v1367_v25 = vadd.f32 %v527_v32, %v460_v31 }
 0x3a1   :  { %v529_v33 = vpop.f32.mrf.mxu0 }
 0x3a2   :  { %v548_v34 = vand.u32 2147483647, %v1367_v25  ;;  %v1370_v35 = vadd.f32 %v529_v33, %v460_v31  ;;  %vm540_vm10 = vcmp.ne.f32.partialorder %v1367_v25, %v1367_v25 }
 0x3a3   :  { %v531_v3 = vpop.f32.mrf.mxu0 }
 0x3a4   :  { %v552_v37 = vsub.f32 0.0, %v548_v34  ;;  %v549_v38 = vand.u32 2147483647, %v1370_v35  ;;  %v1373_v39 = vadd.f32 %v531_v3, %v465_v36  ;;  %vm541_vm11 = vcmp.ne.f32.partialorder %v1370_v35, %v1370_v35 }
 0x3a5   :  { %v533_v40 = vpop.f32.mrf.mxu0 }
 0x3a6   :  { %v556_v41 = vmul.f32 1.442695, %v552_v37  ;;  %v553_v42 = vsub.f32 0.0, %v549_v38  ;;  %v1375_v43 = vadd.f32 %v533_v40, %v465_v36  ;;  %v550_v44 = vand.u32 2147483647, %v1373_v39 }
 0x3a7   :  { %v1378_v45 = vpop.f32.mrf.mxu0  ;;  %vm542_vm14 = vcmp.ne.f32.partialorder %v1373_v39, %v1373_v39 }
 0x3a8   :  { %1102 = vpow2.f32 %v556_v41  ;;  %v558_v46 = vmul.f32 1.442695, %v553_v42  ;;  %v554_v47 = vsub.f32 0.0, %v550_v44  ;;  %v551_v48 = vand.u32 2147483647, %v1375_v43 }
 0x3a9   :  { %v1381_v49 = vpop.f32.mrf.mxu0  ;;  %vm543_vm15 = vcmp.ne.f32.partialorder %v1375_v43, %v1375_v43 }
 0x3aa   :  { %1104 = vpow2.f32 %v558_v46  ;;  %v560_v50 = vmul.f32 1.442695, %v554_v47  ;;  %v555_v51 = vsub.f32 0.0, %v551_v48 }
 0x3ab   :  { %v1383_v52 = vpop.f32.mrf.mxu0 }
 0x3ac   :  { %1106 = vpow2.f32 %v560_v50  ;;  %v562_v53 = vmul.f32 1.442695, %v555_v51  ;;  %v536_v51 = vmax.f32 %v1367_v25, 0.0 }
 0x3ad   :  { %v1385_v54 = vpop.f32.mrf.mxu0 }
 0x3ae   :  { %1108 = vpow2.f32 %v562_v53 }
 0x3af   :  { %v839_v55 = vpop.f32.mrf.mxu0 }
 0x3b0   :  { %v1387_v56 = vadd.f32 %v839_v55, %v460_v31 }
 0x3b1   :  { %v841_v57 = vpop.f32.mrf.mxu0 }
 0x3b2   :  { %v860_v58 = vand.u32 2147483647, %v1387_v56  ;;  %v1390_v60 = vadd.f32 %v841_v57, %v460_v31  ;;  %vm852_vm1 = vcmp.ne.f32.partialorder %v1387_v56, %v1387_v56 }
 0x3b3   :  { %v843_v61 = vpop.f32.mrf.mxu0 }
 0x3b4   :  { %v864_v62 = vsub.f32 0.0, %v860_v58  ;;  %v861_v63 = vand.u32 2147483647, %v1390_v60  ;;  %v1393_v1 = vadd.f32 %v843_v61, %v465_v36  ;;  %v537_v58 = vmax.f32 %v1370_v35, 0.0 }
 0x3b5   :  { %v1103_v0 = vpop.eup %1102  ;;  %v845_v20 = vpop.f32.mrf.mxu0  ;;  %vm853_vm2 = vcmp.ne.f32.partialorder %v1390_v60, %v1390_v60 }
 0x3b6   :  { %v564_v2 = vadd.f32 1.0, %v1103_v0  ;;  %v868_v15 = vmul.f32 1.442695, %v864_v62  ;;  %v865_v17 = vsub.f32 0.0, %v861_v63  ;;  %v862_v18 = vand.u32 2147483647, %v1393_v1 }
 0x3b7   :  { %v1105_v16 = vpop.eup %1104  ;;  %v1396_v26 = vadd.f32 %v845_v20, %v465_v36  ;;  %v567_v34 = vmul.f32 -0.5, %v1103_v0  ;;  %v570_v41 = vand.u32 2147483647, %v1103_v0  ;;  %vm854_vm6 = vcmp.ne.f32.partialorder %v1393_v1, %v1393_v1 }
 0x3b8   :  { %1110 = vlog2.f32 %v564_v2  ;;  %v573_v19 = vadd.f32 1.0, %v1105_v16  ;;  %v870_v21 = vmul.f32 1.442695, %v865_v17  ;;  %v866_v23 = vsub.f32 0.0, %v862_v18 }
 0x3b9   :  { %1112 = vpow2.f32 %v868_v15  ;;  %v1107_v22 = vpop.eup %1106  ;;  %v863_v3 = vand.u32 2147483647, %v1396_v26  ;;  %v576_v37 = vmul.f32 -0.5, %v1105_v16  ;;  %v568_v40 = vadd.f32 1.0, %v567_v34 }
 0x3ba   :  { %1114 = vlog2.f32 %v573_v19  ;;  %v582_v24 = vadd.f32 1.0, %v1107_v22  ;;  %v872_v33 = vmul.f32 1.442695, %v866_v23  ;;  %v585_v42 = vmul.f32 -0.5, %v1107_v22 }
 0x3bb   :  { %v1109_v31 = vpop.eup %1108  ;;  %1116 = vpow2.f32 %v870_v21  ;;  %v867_v38 = vsub.f32 0.0, %v863_v3  ;;  %v577_v46 = vadd.f32 1.0, %v576_v37  ;;  %v579_v36 = vand.u32 2147483647, %v1105_v16 }
 0x3bc   :  { %1118 = vlog2.f32 %v582_v24  ;;  %v591_v32 = vadd.f32 1.0, %v1109_v31  ;;  %v594_v48 = vmul.f32 -0.5, %v1109_v31  ;;  %v569_v55 = vmul.f32 %v1103_v0, %v568_v40 }
 0x3bd   :  { %v874_v44 = vmul.f32 1.442695, %v867_v38  ;;  %vm571_vm8 = vcmp.lt.f32.partialorder %v570_v41, 0.0004427343  ;;  %v586_v61 = vadd.f32 1.0, %v585_v42  ;;  %v578_v15 = vmul.f32 %v1105_v16, %v577_v46 }
 0x3be   :  { %1120 = vlog2.f32 %v591_v32  ;;  %v588_v17 = vand.u32 2147483647, %v1107_v22  ;;  %vm580_vm9 = vcmp.lt.f32.partialorder %v579_v36, 0.0004427343  ;;  %v595_v20 = vadd.f32 1.0, %v594_v48 }
 0x3bf   :  { %1122 = vpow2.f32 %v872_v33  ;;  %v597_v23 = vand.u32 2147483647, %v1109_v31  ;;  %v587_v33 = vmul.f32 %v1107_v22, %v586_v61  ;;  %v538_v3 = vmax.f32 %v1373_v39, 0.0 }
 0x3c0   :  { %1124 = vpow2.f32 %v874_v44  ;;  %vm589_vm12 = vcmp.lt.f32.partialorder %v588_v17, 0.0004427343  ;;  %v596_v42 = vmul.f32 %v1109_v31, %v595_v20  ;;  %vm855_vm7 = vcmp.ne.f32.partialorder %v1396_v26, %v1396_v26 }
 0x3c1   :  { %vm598_vm13 = vcmp.lt.f32.partialorder %v597_v23, 0.0004427343 }
 0x3c5   :  { %v1111_v47 = vpop.eup %1110 }
 0x3c6   :  { %v1399_v50 = vpop.eup %1112  ;;  %v566_v53 = vmul.f32 0.6931472, %v1111_v47 }
 0x3c7   :  { %v1115_v57 = vpop.eup %1114  ;;  %v876_v62 = vadd.f32 1.0, %v1399_v50  ;;  %v879_v47 = vmul.f32 -0.5, %v1399_v50 }
 0x3c8   :  { %v572_v63 = vsel %vm571_vm8, %v569_v55, %v566_v53  ;;  %v575_v2 = vmul.f32 0.6931472, %v1115_v57  ;;  %v1404_v18 = vpop.eup %1116  ;;  %v1427_v53 = vpop.permute.xlu0 %449  ;;  %vm986_vm8 = vcmask 1040384  }
 0x3c9   :  { %v600_v19 = vadd.f32 %v572_v63, %v536_v51  ;;  %1126 = vlog2.f32 %v876_v62  ;;  %v1119_v21 = vpop.eup %1118  ;;  %v885_v37 = vadd.f32 1.0, %v1404_v18  ;;  %v880_v55 = vadd.f32 1.0, %v879_v47  ;;  %v1434_v63 = vpop.permute.xlu1 %454 }
 0x3ca   :  { %v581_v0 = vsel %vm580_vm9, %v578_v15, %v575_v2  ;;  %v584_v16 = vmul.f32 0.6931472, %v1119_v21  ;;  %v888_v61 = vmul.f32 -0.5, %v1404_v18  ;;  %v522_v2 = vadd.f32 %v1363_v29, %v1434_v63 }
 0x3cb   :  { %v604_v24 = vsel %vm540_vm10, %v1367_v25, %v600_v19  ;;  %v601_v32 = vadd.f32 %v581_v0, %v537_v58  ;;  %v1121_v34 = vpop.eup %1120  ;;  %v539_v25 = vmax.f32 %v1375_v43, 0.0  ;;  %v882_v58 = vand.u32 2147483647, %v1399_v50 }
 0x3cc   :  { %1128 = vrcp.f32 %v604_v24  ;;  %v590_v40 = vsel %vm589_vm12, %v587_v33, %v584_v16  ;;  %v593_v41 = vmul.f32 0.6931472, %v1121_v34  ;;  %v1414_v44 = vpop.eup %1122  ;;  %v881_v17 = vmul.f32 %v1399_v50, %v880_v55  ;;  %v1453_v50 = vld [vmem:[%s1567_s0 + $0x8] sm:$0xff] }
 0x3cd   :  { %v605_v38 = vsel %vm541_vm11, %v1370_v35, %v601_v32  ;;  %v602_v46 = vadd.f32 %v590_v40, %v538_v3  ;;  %v894_v35 = vadd.f32 1.0, %v1414_v44  ;;  %v1424_v31 = vpop.eup %1124  ;;  %v524_v20 = vadd.f32 %v1365_v30, %v1434_v63 }
 0x3ce   :  { %1130 = vrcp.f32 %v605_v38  ;;  %v599_v22 = vsel %vm598_vm13, %v596_v42, %v593_v41  ;;  %v903_v57 = vadd.f32 1.0, %v1424_v31  ;;  %vm883_vm0 = vcmp.lt.f32.partialorder %v882_v58, 0.0004427343 }
 0x3cf   :  { %v606_v36 = vsel %vm542_vm14, %v1373_v39, %v602_v46  ;;  %v603_v48 = vadd.f32 %v599_v22, %v539_v25  ;;  %1132 = vlog2.f32 %v885_v37  ;;  %v518_v39 = vadd.f32 %v1359_v27, %v1427_v53  ;;  %v1444_v27 = vld [vmem:[%s1567_s0] sm:$0xff]  ;;  %v1467_v37 = vld [vmem:[%s1567_s0 + $0x18] sm:$0xff] }
 0x3d0   :  { %1134 = vrcp.f32 %v606_v36  ;;  %v848_v21 = vmax.f32 %v1387_v56, 0.0  ;;  %v889_v0 = vadd.f32 1.0, %v888_v61  ;;  %v897_v16 = vmul.f32 -0.5, %v1414_v44 }
 0x3d1   :  { %v607_v51 = vsel %vm543_vm15, %v1375_v43, %v603_v48  ;;  %v520_v43 = vadd.f32 %v1361_v28, %v1427_v53  ;;  %v608_v19 = vsub.f32 %v1444_v27, %v518_v39  ;;  %v891_v3 = vand.u32 2147483647, %v1404_v18 }
 0x3d2   :  { %1136 = vrcp.f32 %v607_v51  ;;  %v611_v40 = vsub.f32 %v1467_v37, %v524_v20  ;;  %v906_v42 = vmul.f32 -0.5, %v1424_v31  ;;  %v849_v25 = vmax.f32 %v1390_v60, 0.0 }
 0x3d3   :  { %1138 = vlog2.f32 %v894_v35  ;;  %v609_v23 = vsub.f32 %v1453_v50, %v520_v43  ;;  %v890_v22 = vmul.f32 %v1404_v18, %v889_v0  ;;  %v898_v35 = vadd.f32 1.0, %v897_v16  ;;  %v1484_v18 = vld [vmem:[%s1574_s1] sm:$0xff] }
 0x3d4   :  { %1140 = vlog2.f32 %v903_v57  ;;  %vm892_vm3 = vcmp.lt.f32.partialorder %v891_v3, 0.0004427343  ;;  %v850_v57 = vmax.f32 %v1393_v1, 0.0  ;;  %v909_v43 = vand.u32 2147483647, %v1424_v31 }
 0x3d5   :  { %1142 = vlog2.f32 %v606_v36  ;;  %vm989_vm9 = vcmask 1041408   ;;  %vm992_vm10 = vcmask 1042432  }
 0x3d6   :  { %v1127_v62 = vpop.eup %1126  ;;  %1144 = vlog2.f32 %v604_v24  ;;  %v1460_v24 = vld [vmem:[%s1567_s0 + $0x10] sm:$0xff]  ;;  %vm910_vm5 = vcmp.lt.f32.partialorder %v909_v43, 0.0004427343  ;;  %v830_v43 = vadd.f32 %v1378_v45, %v1427_v53  ;;  %v834_v45 = vadd.f32 %v1383_v52, %v1434_v63 }
 0x3d7   :  { %v878_v15 = vmul.f32 0.6931472, %v1127_v62  ;;  %1146 = vlog2.f32 %v607_v51  ;;  %v610_v33 = vsub.f32 %v1460_v24, %v522_v2  ;;  %v900_v51 = vand.u32 2147483647, %v1414_v44 }
 0x3d8   :  { %1148 = vlog2.f32 %v605_v38  ;;  %v907_v62 = vadd.f32 1.0, %v906_v42 }
 0x3d9   :  { %v1129_v28 = vpop.eup %1128  ;;  %v884_v29 = vsel %vm883_vm0, %v881_v17, %v878_v15  ;;  %vm1494_vm4 = vcmp.lt.f32.partialorder %v900_v51, 0.0004427343 }
 0x3da   :  { %v613_v32 = vmul.f32 %v1129_v28, %v608_v19  ;;  %v912_v34 = vadd.f32 %v884_v29, %v848_v21  ;;  %v851_v19 = vmax.f32 %v1396_v26, 0.0  ;;  %v1491_v28 = vld [vmem:[%s1574_s1 + $0x10] sm:$0xff]  ;;  %v899_v21 = vmul.f32 %v1414_v44, %v898_v35 }
 0x3db   :  { %v1131_v30 = vpop.eup %1130 }
 0x3dc   :  { %v615_v41 = vmul.f32 %v1131_v30, %v609_v23  ;;  %v1133_v46 = vpop.eup %1132  ;;  %v620_v36 = vmul.f32 %v613_v32, %v613_v32  ;;  %v916_v55 = vsel %vm852_vm1, %v1387_v56, %v912_v34  ;;  %v1501_v23 = vld [vmem:[%s1574_s1 + $0x8] sm:$0xff]  ;;  %v1512_v34 = vld [vmem:[%s1574_s1 + $0x18] sm:$0xff] }
 0x3dd   :  { %v1135_v47 = vpop.eup %1134  ;;  %v887_v48 = vmul.f32 0.6931472, %v1133_v46  ;;  %1150 = vrcp.f32 %v916_v55 }
 0x3de   :  { %v617_v38 = vmul.f32 %v1135_v47, %v610_v33  ;;  %v621_v58 = vmul.f32 %v615_v41, %v615_v41  ;;  %v624_v20 = vmul.f32 %v620_v36, %v1484_v18 }
 0x3df   :  { %v1137_v39 = vpop.eup %1136  ;;  %v893_v61 = vsel %vm892_vm3, %v890_v22, %v887_v48 }
 0x3e0   :  { %v622_v2 = vmul.f32 %v617_v38, %v617_v38  ;;  %v619_v15 = vmul.f32 %v1137_v39, %v611_v40  ;;  %v913_v17 = vadd.f32 %v893_v61, %v849_v25  ;;  %v1139_v56 = vpop.eup %1138  ;;  %v625_v44 = vmul.f32 %v621_v58, %v1501_v23 }
 0x3e1   :  { %v1141_v0 = vpop.eup %1140  ;;  %v896_v33 = vmul.f32 0.6931472, %v1139_v56  ;;  %v908_v40 = vmul.f32 %v1424_v31, %v907_v62  ;;  %v832_v56 = vadd.f32 %v1381_v49, %v1427_v53  ;;  %v836_v49 = vadd.f32 %v1385_v54, %v1434_v63 }
 0x3e2   :  { %v626_v32 = vmul.f32 %v622_v2, %v1491_v28  ;;  %v623_v16 = vmul.f32 %v619_v15, %v619_v15  ;;  %v917_v30 = vsel %vm853_vm2, %v1390_v60, %v913_v17  ;;  %v905_v3 = vmul.f32 0.6931472, %v1141_v0  ;;  %v1143_v41 = vpop.eup %1142 }
 0x3e3   :  { %1152 = vrcp.f32 %v917_v30  ;;  %v902_v60 = vsel %vm1494_vm4, %v899_v21, %v896_v33  ;;  %v1145_v25 = vpop.eup %1144  ;;  %v649_v31 = vmul.f32 0.6931472, %v1143_v41 }
 0x3e4   :  { %v628_v42 = vadd.f32 %v626_v32, %v624_v20  ;;  %v627_v46 = vmul.f32 %v623_v16, %v1512_v34  ;;  %1154 = vlog2.f32 %v916_v55  ;;  %v914_v22 = vadd.f32 %v902_v60, %v850_v57  ;;  %v1147_v36 = vpop.eup %1146 }
 0x3e5   :  { %v911_v47 = vsel %vm910_vm5, %v908_v40, %v905_v3  ;;  %1156 = vlog2.f32 %v917_v30  ;;  %v1149_v38 = vpop.eup %1148  ;;  %v645_v55 = vmul.f32 0.6931472, %v1145_v25  ;;  %v268_v57 = vadd.f32 %v1491_v28, %v1484_v18 }
 0x3e6   :  { %v635_v48 = vadd.f32 %v627_v46, %v625_v44  ;;  %v915_v35 = vadd.f32 %v911_v47, %v851_v19  ;;  %v918_v51 = vsel %vm854_vm6, %v1393_v1, %v914_v22  ;;  %v651_v58 = vmul.f32 0.6931472, %v1147_v36 }
 0x3e7   :  { %1158 = vrcp.f32 %v918_v51  ;;  %v647_v61 = vmul.f32 0.6931472, %v1149_v38  ;;  %v654_v62 = vmul.f32 %v649_v31, %v1491_v28  ;;  %v275_v1 = vadd.f32 %v1512_v34, %v1501_v23 }
 0x3e8   :  { %v919_v39 = vsel %vm855_vm7, %v1396_v26, %v915_v35  ;;  %1160 = vlog2.f32 %v918_v51  ;;  %v652_v2 = vmul.f32 %v645_v55, %v1484_v18  ;;  %v269_v26 = vrot.slane %v268_v57, 4 }
 0x3e9   :  { %1162 = vrcp.f32 %v919_v39  ;;  %v655_v15 = vmul.f32 %v651_v58, %v1512_v34  ;;  %v629_v19 = vrot.slane %v628_v42, 4  ;;  %v653_v20 = vmul.f32 %v647_v61, %v1501_v23 }
 0x3ea   :  { %1164 = vlog2.f32 %v919_v39  ;;  %v1151_v17 = vpop.eup %1150  ;;  %v656_v21 = vadd.f32 %v654_v62, %v652_v2  ;;  %v276_v29 = vrot.slane %v275_v1, 4  ;;  %v636_v0 = vrot.slane %v635_v48, 4 }
 0x3eb   :  { %v920_v32 = vsub.f32 %v1444_v27, %v830_v43  ;;  %v270_v30 = vadd.f32 %v269_v26, %v268_v57  ;;  %v663_v33 = vadd.f32 %v655_v15, %v653_v20  ;;  %v630_v3 = vadd.f32 %v629_v19, %v628_v42 }
 0x3ec   :  { %v921_v40 = vsub.f32 %v1453_v50, %v832_v56  ;;  %v657_v41 = vrot.slane %v656_v21, 4  ;;  %v277_v46 = vadd.f32 %v276_v29, %v275_v1  ;;  %v637_v25 = vadd.f32 %v636_v0, %v635_v48 }
 0x3ed   :  { %v925_v53 = vmul.f32 %v1151_v17, %v920_v32  ;;  %v922_v27 = vsub.f32 %v1460_v24, %v834_v45  ;;  %v271_v52 = vrot.slane %v270_v30, 2  ;;  %v664_v36 = vrot.slane %v663_v33, 4 }
 0x3ee   :  { %v631_v51 = vrot.slane %v630_v3, 2  ;;  %v923_v42 = vsub.f32 %v1467_v37, %v836_v49  ;;  %v658_v54 = vadd.f32 %v657_v41, %v656_v21  ;;  %v278_v63 = vrot.slane %v277_v46, 2 }
 0x3ef   :  { %v932_v50 = vmul.f32 %v925_v53, %v925_v53  ;;  %v638_v48 = vrot.slane %v637_v25, 2  ;;  %v665_v1 = vadd.f32 %v664_v36, %v663_v33  ;;  %v272_v33 = vadd.f32 %v271_v52, %v270_v30 }
 0x3f0   :  { %v1153_v16 = vpop.eup %1152  ;;  %v632_v15 = vadd.f32 %v631_v51, %v630_v3  ;;  %v659_v56 = vrot.slane %v658_v54, 2  ;;  %v279_v41 = vadd.f32 %v278_v63, %v277_v46 }
 0x3f1   :  { %v1155_v44 = vpop.eup %1154  ;;  %v927_v22 = vmul.f32 %v1153_v16, %v921_v40  ;;  %v936_v37 = vmul.f32 %v932_v50, %v1484_v18  ;;  %v639_v0 = vadd.f32 %v638_v48, %v637_v25  ;;  %v273_v25 = vrot.slane %v272_v33, 1 }
 0x3f2   :  { %v1157_v60 = vpop.eup %1156  ;;  %v957_v35 = vmul.f32 0.6931472, %v1155_v44  ;;  %v666_v44 = vrot.slane %v665_v1, 2  ;;  %v660_v53 = vadd.f32 %v659_v56, %v658_v54 }
 0x3f3   :  { %v959_v55 = vmul.f32 0.6931472, %v1157_v60  ;;  %v933_v61 = vmul.f32 %v927_v22, %v927_v22  ;;  %v640_v22 = vrot.slane %v639_v0, 1  ;;  %v274_v46 = vadd.f32 %v273_v25, %v272_v33 }
 0x3f4   :  { %v1159_v47 = vpop.eup %1158  ;;  %v964_v43 = vmul.f32 %v957_v35, %v1484_v18  ;;  %v633_v18 = vrot.slane %v632_v15, 1  ;;  %v667_v35 = vadd.f32 %v666_v44, %v665_v1  ;;  %v661_v52 = vrot.slane %v660_v53, 1 }
 0x3f5   :  { %v1161_v31 = vpop.eup %1160  ;;  %v929_v38 = vmul.f32 %v1159_v47, %v922_v27  ;;  %v965_v20 = vmul.f32 %v959_v55, %v1501_v23  ;;  %v937_v32 = vmul.f32 %v933_v61, %v1501_v23 }
 0x3f6   :  { %v1163_v39 = vpop.eup %1162  ;;  %v961_v57 = vmul.f32 0.6931472, %v1161_v31  ;;  %v634_v51 = vadd.f32 %v633_v18, %v632_v15  ;;  %v668_v63 = vrot.slane %v667_v35, 1 }
 0x3f7   :  { %v1165_v58 = vpop.eup %1164  ;;  %v934_v24 = vmul.f32 %v929_v38, %v929_v38  ;;  %v931_v62 = vmul.f32 %v1163_v39, %v923_v42  ;;  %v280_v42 = vrot.slane %v279_v41, 1  ;;  %v641_v39 = vadd.f32 %v640_v22, %v639_v0 }
 0x3f8   :  { %v966_v2 = vmul.f32 %v961_v57, %v1491_v28  ;;  %v963_v26 = vmul.f32 0.6931472, %v1165_v58  ;;  %v642_v58 = vmul.f32 0.5, %v634_v51 }
 0x3f9   :  { %v938_v17 = vmul.f32 %v934_v24, %v1491_v28  ;;  %v935_v19 = vmul.f32 %v931_v62, %v931_v62  ;;  %v662_v62 = vadd.f32 %v661_v52, %v660_v53  ;;  %v281_v1 = vadd.f32 %v280_v42, %v279_v41 }
 0x3fa   :  { %v968_v21 = vadd.f32 %v966_v2, %v964_v43  ;;  %v967_v29 = vmul.f32 %v963_v26, %v1512_v34  ;;  %v643_v43 = vmul.f32 0.5, %v641_v39 }
 0x3fb   :  { %v940_v45 = vadd.f32 %v938_v17, %v936_v37  ;;  %v939_v16 = vmul.f32 %v935_v19, %v1512_v34  ;;  %v672_v37 = vmul.f32 0.9189385, %v274_v46  ;;  %v669_v17 = vadd.f32 %v668_v63, %v667_v35 }
 0x3fc   :  { %v969_v3 = vrot.slane %v968_v21, 4  ;;  %v975_v40 = vadd.f32 %v967_v29, %v965_v20  ;;  %v670_v19 = vadd.f32 %v662_v62, %v642_v58  ;;  %v673_v29 = vmul.f32 0.9189385, %v281_v1 }
 0x3fd   :  { %v941_v49 = vrot.slane %v940_v45, 4  ;;  %v947_v28 = vadd.f32 %v939_v16, %v937_v32  ;;  %v671_v0 = vadd.f32 %v669_v17, %v643_v43 }
 0x3fe   :  { %v970_v60 = vadd.f32 %v969_v3, %v968_v21  ;;  %v976_v27 = vrot.slane %v975_v40, 4  ;;  %v674_v33 = vadd.f32 %v672_v37, %v670_v19 }
 0x3ff   :  { %v942_v47 = vadd.f32 %v941_v49, %v940_v45  ;;  %v948_v36 = vrot.slane %v947_v28, 4 }
 0x400   :  { %v971_v23 = vrot.slane %v970_v60, 2  ;;  %v977_v31 = vadd.f32 %v976_v27, %v975_v40  ;;  %v675_v40 = vadd.f32 %v673_v29, %v671_v0 }
 0x401   :  { %v943_v34 = vrot.slane %v942_v47, 2  ;;  %v949_v30 = vadd.f32 %v948_v36, %v947_v28 }
 0x402   :  { %v972_v50 = vadd.f32 %v971_v23, %v970_v60  ;;  %v978_v38 = vrot.slane %v977_v31, 2 }
 0x403   :  { %v944_v55 = vadd.f32 %v943_v34, %v942_v47  ;;  %v950_v54 = vrot.slane %v949_v30, 2 }
 0x404   :  { %v979_v57 = vadd.f32 %v978_v38, %v977_v31  ;;  %v973_v61 = vrot.slane %v972_v50, 1 }
 0x405   :  { %v945_v48 = vrot.slane %v944_v55, 1  ;;  %v951_v24 = vadd.f32 %v950_v54, %v949_v30 }
 0x406   :  { %v980_v15 = vrot.slane %v979_v57, 1  ;;  %v974_v20 = vadd.f32 %v973_v61, %v972_v50 }
 0x407   :  { %v946_v2 = vadd.f32 %v945_v48, %v944_v55  ;;  %v952_v26 = vrot.slane %v951_v24, 1 }
 0x408   :  { %v981_v16 = vadd.f32 %v980_v15, %v979_v57 }
 0x409   :  { %v954_v56 = vmul.f32 0.5, %v946_v2  ;;  %v953_v21 = vadd.f32 %v952_v26, %v951_v24 }
 0x40b   :  { %v982_v32 = vadd.f32 %v974_v20, %v954_v56  ;;  %v955_v45 = vmul.f32 0.5, %v953_v21 }
 0x40d   :  { %v984_v44 = vadd.f32 %v982_v32, %v672_v37  ;;  %v983_v3 = vadd.f32 %v981_v16, %v955_v45 }
 0x40f   :  { %v987_v18 = vsel %vm986_vm8, %v674_v33, %v984_v44  ;;  %v985_v49 = vadd.f32 %v983_v3, %v673_v29 }
 0x410   :  { %v990_v28 = vsel %vm989_vm9, %v987_v18, %v326_v59 }
 0x411   :  { %v993_v53 = vsel %vm992_vm10, %v990_v28, %v720_v12  ;;  %v988_v41 = vsel %vm986_vm8, %v675_v40, %v985_v49 }
 0x412   :  { %v991_v60 = vsel %vm989_vm9, %v988_v41, %v327_v13 }
 0x413   :  { %v994_v27 = vsel %vm992_vm10, %v991_v60, %v721_v14 }
 0x414   :  { %v997_v22 = vcombine.low %v993_v53, %v994_v27 }
 0x416   :  { %999 = vst [vmem:[%s1575_s8] sm:$0xff] %v997_v22 }

</bundles_post_ra>
